<compile_context>
chip_gen: v6e
topology: v6e:2x2x1
jax: 0.10.0
libtpu: 0.0.40
codegen_flags: <defaults>
</compile_context>

<pallas_src>
import functools

import jax
import jax.numpy as jnp
from jax.experimental import pallas as pl
from jax.experimental.pallas import tpu as pltpu


def moe_adaptor_kernel(x_ref, wfused_ref, ball_ref, sel_ref, o_ref):
    """One row-tile of the MoE adaptor.

    x_ref:      (tm, D_in)          VMEM tile of flattened inputs
    wfused_ref: (D_in, 2*E*D_out)   [w_gate repeated per-lane | fused W_all]
    ball_ref:   (1, E*D_out)        flattened expert biases
    sel_ref:    (E*D_out, D_out)    block-identity selection matrix
    o_ref:      (tm, D_out)         output tile
    """
    ed, d_out = sel_ref.shape                         # E*D_out, D_out (static)

    x = x_ref[...]                                    # native dtype to the MXU

    # --- ONE fused matmul for gating logits (lane-repeated) + experts -------
    z = jnp.dot(x, wfused_ref[...],
                preferred_element_type=jnp.float32)   # (tm, 2*E*D_out)
    logits_rep = z[:, :ed]                            # vreg-aligned split: free
    y_all = z[:, ed:]                                 # (tm, E*D_out)

    # --- softmax over experts, computed on the lane-repeated logits ---------
    # Each logit appears D_out times, so max is unchanged and the lane sum is
    # D_out * (true softmax denominator).
    m = jnp.max(logits_rep, axis=-1, keepdims=True)
    p = jnp.exp(logits_rep - m)
    denom = jnp.sum(p, axis=-1, keepdims=True)        # = D_out * softmax denom
    gates_rep = p * (float(d_out) / denom)            # exact divide on (tm,1)

    # --- gate-weighted expert sum: one VPU multiply + one tiny MXU matmul ---
    # weighted[:, e*D_out + d] = gates[:, e] * (y_e[:, d] + b_e[d])
    weighted = gates_rep * (y_all + ball_ref[...])    # full-vreg VPU mul/add
    acc = jnp.dot(weighted, sel_ref[...],
                  preferred_element_type=jnp.float32)  # (tm, D_out)

    o_ref[...] = acc.astype(o_ref.dtype)


def _round_up(a, b):
    return (a + b - 1) // b * b


@functools.partial(jax.jit, static_argnames=("tm", "compute_dtype"))
def moe_adaptor_forward(x, w_gate, w_experts, b_experts, *,
                        tm=2048, compute_dtype=jnp.float32):
    """x: [B, S, D_in] -> [B, S, D_out]."""
    B, S, D_in = x.shape
    E, _, D_out = w_experts.shape
    N = B * S
    ED = E * D_out

    # Fuse expert weights into a single lane-dense [D_in, E*D_out] matrix:
    #   w_all[:, e*D_out + d] == w_experts[e, :, d]
    w_all = jnp.transpose(w_experts, (1, 0, 2)).reshape(D_in, ED)
    # Repeat each gating column D_out times so the gating logits (and hence
    # the gates) come out of the matmul lane-aligned with y_all.
    w_gate_rep = jnp.repeat(w_gate, D_out, axis=1)               # (D_in, E*D_out)
    # One shared-LHS matmul: [gating | experts]  -> (D_in, 2*E*D_out)
    w_fused = jnp.concatenate([w_gate_rep, w_all], axis=1).astype(compute_dtype)

    b_all = b_experts.reshape(1, ED).astype(jnp.float32)         # (1, E*D_out)
    # Block-identity selection matrix: sel[e*D_out + d', d] = (d' == d)
    sel = jnp.tile(jnp.eye(D_out, dtype=jnp.float32), (E, 1))    # (E*D_out, D_out)

    # Row tiling: pad N instead of asserting divisibility; clamp the tile for
    # tiny inputs so small problems run in a single grid step.
    tm_eff = min(tm, _round_up(N, 8))
    if N >= 1024:
        # Keep >= 2 grid steps so both v7x TensorCores (megacore) get work.
        tm_eff = min(tm_eff, _round_up((N + 1) // 2, 8))
    N_pad = _round_up(N, tm_eff)

    x_flat = x.reshape(N, D_in).astype(compute_dtype)
    if N_pad != N:
        x_flat = jnp.pad(x_flat, ((0, N_pad - N), (0, 0)))

    # VMEM budget: double-buffered x/out tiles + (grid-invariant but
    # double-buffered) weights + in-kernel f32 temporaries + headroom.
    elt = jnp.dtype(compute_dtype).itemsize
    out_elt = jnp.dtype(x.dtype).itemsize
    tile_bytes = 2 * tm_eff * (D_in * elt + D_out * out_elt)
    weight_bytes = 2 * (D_in * 2 * ED * elt + ED * 4 + ED * D_out * 4)
    temp_bytes = tm_eff * (2 * ED + 4 * ED + D_out) * 4
    vmem_limit = int(min(max(tile_bytes + weight_bytes + temp_bytes + (2 << 20),
                             16 << 20), 48 << 20))

    out_flat = pl.pallas_call(
        moe_adaptor_kernel,
        out_shape=jax.ShapeDtypeStruct((N_pad, D_out), x.dtype),
        grid_spec=pltpu.PrefetchScalarGridSpec(
            num_scalar_prefetch=0,
            grid=(N_pad // tm_eff,),
            in_specs=[
                pl.BlockSpec((tm_eff, D_in), lambda i: (i, 0)),
                pl.BlockSpec((D_in, 2 * ED), lambda i: (0, 0)),
                pl.BlockSpec((1, ED), lambda i: (0, 0)),
                pl.BlockSpec((ED, D_out), lambda i: (0, 0)),
            ],
            out_specs=pl.BlockSpec((tm_eff, D_out), lambda i: (i, 0)),
        ),
        compiler_params=pltpu.CompilerParams(
            dimension_semantics=("parallel",),
            vmem_limit_bytes=vmem_limit),
    )(x_flat, w_fused, b_all, sel)

    return out_flat[:N].reshape(B, S, D_out)


def moe_adaptor_reference(x, w_gate, w_experts, b_experts):
    """Plain-JAX reference matching the PyTorch forward (eval mode)."""
    logits = jnp.einsum("bsd,de->bse", x, w_gate)
    gates = jax.nn.softmax(logits, axis=-1)                          # [B,S,E]
    expert_out = jnp.einsum("bsd,edo->bseo", x, w_experts) + b_experts[None, None]
    return jnp.sum(gates[..., None] * expert_out, axis=-2)


if __name__ == "__main__":
    # Module config: n_exps=8, layers=[32, 16]
    B, S, D_in, D_out, E = 2, 8, 32, 16, 8

    key = jax.random.PRNGKey(0)
    kx, kw, kb, kg = jax.random.split(key, 4)

    x = jax.random.normal(kx, (B, S, D_in), dtype=jnp.float32)

    # Expert PWLayer weights: nn.Linear(D_in, D_out), weight ~ N(0, 0.02),
    # stored pre-transposed as [E, D_in, D_out]; bias ~ default Linear init.
    w_experts = 0.02 * jax.random.normal(kw, (E, D_in, D_out), dtype=jnp.float32)
    bound = 1.0 / (D_in ** 0.5)
    b_experts = jax.random.uniform(kb, (E, D_out), minval=-bound, maxval=bound,
                                   dtype=jnp.float32)
    # w_gate is torch.zeros in __init__; use small deterministic values so the
    # softmax gating path is actually exercised (zeros -> uniform gates).
    w_gate = 0.02 * jax.random.normal(kg, (D_in, E), dtype=jnp.float32)

    # --- test 1: small shape, single grid step ------------------------------
    out = moe_adaptor_forward(x, w_gate, w_experts, b_experts)
    out = jax.block_until_ready(out)
    ref = moe_adaptor_reference(x, w_gate, w_experts, b_experts)
    assert out.shape == (B, S, D_out), out.shape
    assert jnp.allclose(out, ref, atol=1e-5, rtol=1e-5), \
        float(jnp.max(jnp.abs(out - ref)))

    # --- test 2: padding path (N=15, not a multiple of the tile) + 2 steps --
    B2, S2 = 3, 5
    x2 = jax.random.normal(jax.random.PRNGKey(1), (B2, S2, D_in), jnp.float32)
    out2 = moe_adaptor_forward(x2, w_gate, w_experts, b_experts, tm=8)
    out2 = jax.block_until_ready(out2)
    ref2 = moe_adaptor_reference(x2, w_gate, w_experts, b_experts)
    assert out2.shape == (B2, S2, D_out), out2.shape
    assert jnp.allclose(out2, ref2, atol=1e-5, rtol=1e-5), \
        float(jnp.max(jnp.abs(out2 - ref2)))

    # --- test 3: moderate N -> large tile, forced >= 2 grid steps -----------
    B3, S3 = 8, 256                                   # N = 2048
    x3 = jax.random.normal(jax.random.PRNGKey(2), (B3, S3, D_in), jnp.float32)
    out3 = moe_adaptor_forward(x3, w_gate, w_experts, b_experts)
    out3 = jax.block_until_ready(out3)
    ref3 = moe_adaptor_reference(x3, w_gate, w_experts, b_experts)
    assert out3.shape == (B3, S3, D_out), out3.shape
    assert jnp.allclose(out3, ref3, atol=1e-5, rtol=1e-5), \
        float(jnp.max(jnp.abs(out3 - ref3)))

    # --- test 4: bf16 compute path (halves HBM traffic; looser tolerance) ---
    out4 = moe_adaptor_forward(x3, w_gate, w_experts, b_experts,
                               compute_dtype=jnp.bfloat16)
    out4 = jax.block_until_ready(out4)
    assert out4.shape == (B3, S3, D_out), out4.shape
    assert jnp.allclose(out4, ref3, atol=1e-2, rtol=1e-2), \
        float(jnp.max(jnp.abs(out4 - ref3)))

    print("KERNEL_OK")
</pallas_src>

<mosaic_0001>
module attributes {stable_mosaic.version = 11 : i64} {
  func.func @moe_adaptor_kernel(%arg0: i32, %arg1: memref<16x32xf32, #tpu.memory_space<vmem>>, %arg2: memref<32x256xf32, #tpu.memory_space<vmem>>, %arg3: memref<1x128xf32, #tpu.memory_space<vmem>>, %arg4: memref<128x16xf32, #tpu.memory_space<vmem>>, %arg5: memref<16x16xf32, #tpu.memory_space<vmem>>) attributes {dimension_semantics = [#tpu.dimension_semantics<parallel>], iteration_bounds = array<i64: 1>, scalar_prefetch = 0 : i64, scratch_operands = 0 : i64, tpu.core_type = #tpu.core_type<tc>, window_params = [{transform_indices = @transform_0, window_bounds = array<i64: 16, 32>}, {pipeline_mode = #tpu.pipeline_mode<synchronous>, transform_indices = @transform_1, window_bounds = array<i64: 32, 256>}, {pipeline_mode = #tpu.pipeline_mode<synchronous>, transform_indices = @transform_2, window_bounds = array<i64: 1, 128>}, {pipeline_mode = #tpu.pipeline_mode<synchronous>, transform_indices = @transform_3, window_bounds = array<i64: 128, 16>}, {transform_indices = @transform_4, window_bounds = array<i64: 16, 16>}]} {
    %c0 = arith.constant 0 : index
    %c0_0 = arith.constant 0 : index
    %0 = vector.load %arg1[%c0, %c0_0] : memref<16x32xf32, #tpu.memory_space<vmem>>, vector<16x32xf32>
    %c0_1 = arith.constant 0 : index
    %c0_2 = arith.constant 0 : index
    %1 = vector.load %arg2[%c0_1, %c0_2] : memref<32x256xf32, #tpu.memory_space<vmem>>, vector<32x256xf32>
    %cst = arith.constant dense<0.000000e+00> : vector<16x256xf32>
    %2 = tpu.matmul %0, %1, %cst {dimension_numbers = #tpu.dot_dimension_numbers<[1], [0], [0], [1], [0, 0, 1, 1], [], []>} : vector<16x32xf32>, vector<32x256xf32>, vector<16x256xf32> -> vector<16x256xf32>
    %3 = vector.extract_strided_slice %2 {offsets = [0, 0], sizes = [16, 128], strides = [1, 1]} : vector<16x256xf32> to vector<16x128xf32>
    %4 = vector.extract_strided_slice %2 {offsets = [0, 128], sizes = [16, 128], strides = [1, 1]} : vector<16x256xf32> to vector<16x128xf32>
    %cst_3 = arith.constant dense<0xFF800000> : vector<16xf32>
    %5 = vector.multi_reduction <maximumf>, %3, %cst_3 [1] : vector<16x128xf32> to vector<16xf32>
    %6 = vector.shape_cast %5 : vector<16xf32> to vector<16x1xf32>
    %7 = vector.broadcast %6 : vector<16x1xf32> to vector<16x128xf32>
    %8 = arith.subf %3, %7 : vector<16x128xf32>
    %9 = math.exp %8 : vector<16x128xf32>
    %cst_4 = arith.constant dense<0.000000e+00> : vector<16xf32>
    %10 = vector.multi_reduction <add>, %9, %cst_4 [1] : vector<16x128xf32> to vector<16xf32>
    %11 = vector.shape_cast %10 : vector<16xf32> to vector<16x1xf32>
    %cst_5 = arith.constant 1.600000e+01 : f32
    %12 = vector.broadcast %cst_5 : f32 to vector<16x1xf32>
    %13 = arith.divf %12, %11 : vector<16x1xf32>
    %14 = vector.broadcast %13 : vector<16x1xf32> to vector<16x128xf32>
    %15 = arith.mulf %9, %14 : vector<16x128xf32>
    %c0_6 = arith.constant 0 : index
    %c0_7 = arith.constant 0 : index
    %16 = vector.load %arg3[%c0_6, %c0_7] : memref<1x128xf32, #tpu.memory_space<vmem>>, vector<1x128xf32>
    %17 = vector.broadcast %16 : vector<1x128xf32> to vector<16x128xf32>
    %18 = arith.addf %4, %17 : vector<16x128xf32>
    %19 = arith.mulf %15, %18 : vector<16x128xf32>
    %c0_8 = arith.constant 0 : index
    %c0_9 = arith.constant 0 : index
    %20 = vector.load %arg4[%c0_8, %c0_9] : memref<128x16xf32, #tpu.memory_space<vmem>>, vector<128x16xf32>
    %cst_10 = arith.constant dense<0.000000e+00> : vector<16x16xf32>
    %21 = tpu.matmul %19, %20, %cst_10 {dimension_numbers = #tpu.dot_dimension_numbers<[1], [0], [0], [1], [0, 0, 1, 1], [], []>} : vector<16x128xf32>, vector<128x16xf32>, vector<16x16xf32> -> vector<16x16xf32>
    %c0_11 = arith.constant 0 : index
    %c0_12 = arith.constant 0 : index
    %22 = vector.load %arg5[%c0_11, %c0_12] : memref<16x16xf32, #tpu.memory_space<vmem>>, vector<16x16xf32>
    tpu.vector_store %arg5[%c0_11, %c0_12], %21 {strides = array<i32>} : memref<16x16xf32, #tpu.memory_space<vmem>>, vector<16x16xf32>,
    return
  }
  func.func @transform_0(%arg0: i32) -> (i32, i32) {
    %c0_i32 = arith.constant 0 : i32
    %c0_i32_0 = arith.constant 0 : i32
    return %arg0, %c0_i32 : i32, i32
  }
  func.func @transform_1(%arg0: i32) -> (i32, i32) {
    %c0_i32 = arith.constant 0 : i32
    %c0_i32_0 = arith.constant 0 : i32
    %c0_i32_1 = arith.constant 0 : i32
    return %c0_i32, %c0_i32_0 : i32, i32
  }
  func.func @transform_2(%arg0: i32) -> (i32, i32) {
    %c0_i32 = arith.constant 0 : i32
    %c0_i32_0 = arith.constant 0 : i32
    %c0_i32_1 = arith.constant 0 : i32
    return %c0_i32, %c0_i32_0 : i32, i32
  }
  func.func @transform_3(%arg0: i32) -> (i32, i32) {
    %c0_i32 = arith.constant 0 : i32
    %c0_i32_0 = arith.constant 0 : i32
    %c0_i32_1 = arith.constant 0 : i32
    return %c0_i32, %c0_i32_0 : i32, i32
  }
  func.func @transform_4(%arg0: i32) -> (i32, i32) {
    %c0_i32 = arith.constant 0 : i32
    %c0_i32_0 = arith.constant 0 : i32
    return %arg0, %c0_i32 : i32, i32
  }
}

</mosaic_0001>

<bundles_post_ra>
// kernel: moe_adaptor_forward.1
= control target key start
LH: loop header
LB: loop body
LE: loop exit
PB: predicated region body
PF: predicated region fallthrough
CT: control target
= control target key end

     0   :  { %v343_v4 = vmov 0.0   ;;  %s459_s0 = inlined_call_operand.vmem [shape: f32[16,32], index: 0, kind: input, shape index: {}]   ;;  %s460_s1 = inlined_call_operand.vmem [shape: f32[32,256], index: 1, kind: input, shape index: {}]   ;;  %s461_s2 = inlined_call_operand.vmem [shape: f32[1,128], index: 2, kind: input, shape index: {}]   ;;  %s462_s3 = inlined_call_operand.vmem [shape: f32[128,16], index: 3, kind: input, shape index: {}]   ;;  %s463_s4 = inlined_call_operand.hbm [shape: f32[16,16], index: 4, kind: output, shape index: {}]  }
   0x1   :  { %v27_v0 = vld [vmem:[%s460_s1 + $0x38] sm:$0xff]  ;;  %v26_v1 = vld [vmem:[%s460_s1 + $0x30] sm:$0xff]  ;;  %v25_v2 = vld [vmem:[%s460_s1 + $0x28] sm:$0xff]  ;;  %99 = vmatprep.mubr.f32.mxu0 %v343_v4 }
   0x2   :  { %59 = vmatprep.subr.mxu0 %v27_v0  ;;  %v24_v3 = vld [vmem:[%s460_s1 + $0x20] sm:$0xff]  ;;  %v23_v5 = vld [vmem:[%s460_s1 + $0x18] sm:$0xff]  ;;  %v22_v6 = vld [vmem:[%s460_s1 + $0x10] sm:$0xff] }
   0x3   :  { %60 = vmatpush1.msra.mxu0 %v26_v1 }
   0x4   :  { %61 = vmatprep.subr.mxu0 %v25_v2 }
   0x5   :  { %9 = vsyncpa [#allocation3], 0  ;;  %62 = vmatpush1.msra.mxu0 %v24_v3  ;;  %v21_v7 = vld [vmem:[%s460_s1 + $0x8] sm:$0xff]  ;;  %v20_v8 = vld [vmem:[%s460_s1] sm:$0xff]  ;;  %vm28_vm0 = vcmask 261120   ;;  %vm234_vm1 = vcmask 130048  }
   0x6   :  { %63 = vmatprep.subr.mxu0 %v23_v5  ;;  %v18_v9 = vld [vmem:[%s459_s0] sm:$0xff]  ;;  %v19_v10 = vld [vmem:[%s459_s0 + $0x8] sm:$0xff]  ;;  %v158_v14 = vld [vmem:[%s462_s3 + $0x78] sm:$0xff] }
   0x7   :  { %64 = vmatpush1.msra.mxu0 %v22_v6  ;;  %v157_v15 = vld [vmem:[%s462_s3 + $0x70] sm:$0xff]  ;;  %274 = vmatprep.subr.mxu1 %v158_v14  ;;  %v156_v16 = vld [vmem:[%s462_s3 + $0x68] sm:$0xff]  ;;  %v155_v17 = vld [vmem:[%s462_s3 + $0x60] sm:$0xff] }
   0x8   :  { %65 = vmatprep.subr.mxu0 %v21_v7  ;;  %275 = vmatpush3.msra.mxu1 %v158_v14  ;;  %v154_v26 = vld [vmem:[%s462_s3 + $0x58] sm:$0xff]  ;;  %v153_v27 = vld [vmem:[%s462_s3 + $0x50] sm:$0xff]  ;;  %v152_v28 = vld [vmem:[%s462_s3 + $0x48] sm:$0xff] }
   0x9   :  { %66 = vmatpush1.msra.mxu0 %v20_v8  ;;  %276 = vmatprep.subr.mxu1 %v157_v15  ;;  %v151_v29 = vld [vmem:[%s462_s3 + $0x40] sm:$0xff]  ;;  %v150_v30 = vld [vmem:[%s462_s3 + $0x38] sm:$0xff]  ;;  %v149_v31 = vld [vmem:[%s462_s3 + $0x30] sm:$0xff] }
   0xa   :  { %253 = vmatmul.mubr.msk.f32.vlgmr.msra.gmra.mxu0 %vm28_vm0, %v18_v9  ;;  %277 = vmatpush3.msra.mxu1 %v157_v15  ;;  %v148_v32 = vld [vmem:[%s462_s3 + $0x28] sm:$0xff]  ;;  %v147_v33 = vld [vmem:[%s462_s3 + $0x20] sm:$0xff]  ;;  %v146_v34 = vld [vmem:[%s462_s3 + $0x18] sm:$0xff] }
   0xb   :  { %105 = vmatprep.mubr.f32.mxu0 %v343_v4  ;;  %278 = vmatprep.subr.mxu1 %v156_v16  ;;  %v145_v35 = vld [vmem:[%s462_s3 + $0x10] sm:$0xff]  ;;  %v144_v36 = vld [vmem:[%s462_s3 + $0x8] sm:$0xff]  ;;  %v143_v37 = vld [vmem:[%s462_s3] sm:$0xff]  ;;  %s344_s3 = smov [#allocation2]  }
   0xc   :  { %279 = vmatpush3.msra.mxu1 %v156_v16  ;;  %v255_v41 = vld [vmem:[%s461_s2] ss:$0 sm:$0xff]  ;;  %s242_s0 = sshll.u32 %s344_s3, 4  ;;  %s243_s0 = int_to_ptr.vmem [resolvable:$true] %s242_s0 }
   0xd   :  { %280 = vmatprep.subr.mxu1 %v155_v17  ;;  %s321_s2 = scalar_lea.vmem %s243_s0, 256  ;;  %p326_p1 = scmp.lt.s32.totalorder %s243_s0, %s243_s0 }
   0xe   :  { %254 = vmatmul.mubr.msk.f32.gmra.mxu0 %vm28_vm0, %v19_v10  ;;  %281 = vmatpush3.msra.mxu1 %v155_v17  ;;  %p322_p0 = scmp.ne.s32.totalorder %s243_s0, %s321_s2  ;;  %p327_p2 = scmp.lt.s32.totalorder %s321_s2, %s321_s2 }
   0xf   :  { %282 = vmatprep.subr.mxu1 %v154_v26 }
  0x10   :  { %283 = vmatpush3.msra.mxu1 %v154_v26  ;;  %p328_p3 = por %p327_p2, %p326_p1 }
  0x11   :  { %284 = vmatprep.subr.mxu1 %v153_v27 }
  0x12   :  { %285 = vmatpush3.msra.mxu1 %v153_v27  ;;  %p329_p4 = pnand %p328_p3, %p322_p0 }
  0x13   :  { %286 = vmatprep.subr.mxu1 %v152_v28 }
  0x14   :  { %287 = vmatpush3.msra.mxu1 %v152_v28 }
  0x15   :  { %288 = vmatprep.subr.mxu1 %v151_v29 }
  0x16   :  { %289 = vmatpush3.msra.mxu1 %v151_v29 }
  0x17   :  { %290 = vmatprep.subr.mxu1 %v150_v30 }
  0x18   :  { %291 = vmatpush3.msra.mxu1 %v150_v30 }
  0x19   :  { %292 = vmatprep.subr.mxu1 %v149_v31 }
  0x1a   :  { %293 = vmatpush3.msra.mxu1 %v149_v31 }
  0x1b   :  { %294 = vmatprep.subr.mxu1 %v148_v32 }
  0x1c   :  { %295 = vmatpush3.msra.mxu1 %v148_v32 }
  0x1d   :  { %296 = vmatprep.subr.mxu1 %v147_v33 }
  0x1e   :  { %297 = vmatpush3.msra.mxu1 %v147_v33 }
  0x1f   :  { %298 = vmatprep.subr.mxu1 %v146_v34 }
  0x20   :  { %299 = vmatpush3.msra.mxu1 %v146_v34 }
  0x21   :  { %300 = vmatprep.subr.mxu1 %v145_v35 }
  0x22   :  { %301 = vmatpush3.msra.mxu1 %v145_v35 }
  0x23   :  { %302 = vmatprep.subr.mxu1 %v144_v36 }
  0x24   :  { %303 = vmatpush3.msra.mxu1 %v144_v36 }
  0x25   :  { %304 = vmatprep.subr.mxu1 %v143_v37 }
  0x26   :  { %305 = vmatpush3.msra.mxu1 %v143_v37 }
  0xca   :  { %v101_v11 = vpop.f32.mrf.mxu0 }
  0xcb   :  { %112 = vmax.xlane.f32.xlu0 %v101_v11 }
  0xcc   :  { %v402_v12 = vpop.f32.mrf.mxu0 }
  0xcd   :  { %v139_v43 = vadd.f32 %v255_v41, %v402_v12 }
  0xce   :  { %v107_v13 = vpop.f32.mrf.mxu0 }
  0xcf   :  { %114 = vmax.xlane.f32.xlu0 %v107_v13 }
  0xd0   :  { %v109_v46 = vpop.f32.mrf.mxu0 }
  0xd1   :  { %v140_v49 = vadd.f32 %v255_v41, %v109_v46 }
 0x154   :  { %v113_v18 = vpop.xlane.xlu0 %112 }
 0x155   :  { %v116_v19 = vsub.f32 %v101_v11, %v113_v18 }
 0x157   :  { %v118_v20 = vmul.f32 1.442695, %v116_v19 }
 0x158   :  { %v115_v21 = vpop.xlane.xlu0 %114 }
 0x159   :  { %313 = vpow2.f32 %v118_v20  ;;  %v117_v22 = vsub.f32 %v107_v13, %v115_v21 }
 0x15b   :  { %v120_v23 = vmul.f32 1.442695, %v117_v22 }
 0x15d   :  { %315 = vpow2.f32 %v120_v23 }
 0x166   :  { %v314_v24 = vpop.eup %313 }
 0x167   :  { %122 = vadd.xlane.f32.xlu1 %v314_v24 }
 0x16a   :  { %v316_v25 = vpop.eup %315 }
 0x16b   :  { %124 = vadd.xlane.f32.xlu1 %v316_v25 }
 0x1f0   :  { %v123_v38 = vpop.xlane.xlu1 %122 }
 0x1f1   :  { %317 = vrcp.f32 %v123_v38 }
 0x1f4   :  { %v125_v39 = vpop.xlane.xlu1 %124 }
 0x1f5   :  { %319 = vrcp.f32 %v125_v39 }
 0x1fe   :  { %v318_v40 = vpop.eup %317 }
 0x1ff   :  { %v127_v42 = vmul.f32 16.0, %v318_v40 }
 0x201   :  { %v130_v44 = vmul.f32 %v314_v24, %v127_v42 }
 0x202   :  { %v320_v45 = vpop.eup %319 }
 0x203   :  { %v129_v47 = vmul.f32 16.0, %v320_v45  ;;  %v141_v48 = vmul.f32 %v139_v43, %v130_v44 }
 0x205   :  { %v131_v50 = vmul.f32 %v316_v25, %v129_v47  ;;  %306 = vmatprep.mubr.f32.mxu1 %v141_v48 }
 0x207   :  { %v142_v51 = vmul.f32 %v140_v49, %v131_v50 }
 0x209   :  { %307 = vmatmul.mubr.f32.vlgmr.msra.gmra.mxu1 %v142_v51 }
 0x2c9   :  { %v308_v52 = vpop.f32.mrf.mxu1 }
 0x2ca   :  { %236 = vst.msk [vmem:[#allocation2 + $0x8] sm:$0xff] %vm234_vm1, %v308_v52 }
 0x2cb   :  { %v225_v53 = vpop.f32.mrf.mxu1 }
 0x2cc   :  { %235 = vst.msk [vmem:[#allocation2] sm:$0xff] %vm234_vm1, %v225_v53 }
 0x2cd   :  { %332 = shalt.err (!%p329_p4)
}
 0x2ce   :  { %s345_s14 = smov 128   ;;  %s346_s15 = smov 8  }
 0x2cf   :  { %248 = dma.vmem_to_hbm [thread:$0]  %s243_s0, 256, %s463_s4, [#allocation3], %s345_s14, %s345_s14, %s346_s15  }
 0x2d0   :  { %341 = dma.done.wait [#allocation3], 256  }
 0x2d1   :  { %342 = vsyncadd [#allocation3], 4294967040 }
 0x2d2   :  { %252 = vsyncpa [#allocation3], 1 }

</bundles_post_ra>
